<compile_context>
chip_gen: v6e
topology: v6e:2x2x1
jax: 0.10.0
libtpu: 0.0.40
codegen_flags: <defaults>
</compile_context>

<pallas_src>
import functools

import jax
import jax.numpy as jnp
import numpy as np
from jax.experimental import pallas as pl
from jax.experimental.pallas import tpu as pltpu


def st_gcn_kernel(x_ref, w_ref, bd_ref, bias_ref, o_ref):
    # x_ref   : (NB*C_in , TB*L)      activations (input dtype; cast here)
    # w_ref   : (K*NB*C_out, NB*C_in) block-diag stacked 1x1-conv weight
    # bd_ref  : (K, L, L)             block-diag adjacency kron(I_TT, A_pad[k])
    # bias_ref: (NB*C_out, L)         bias folded through the contraction (f32)
    # o_ref   : (NB*C_out, TB*L)
    num_k, l, _ = bd_ref.shape
    rows = bias_ref.shape[0]            # NB * C_out
    tb = o_ref.shape[1] // l
    cdt = w_ref.dtype                   # MXU compute dtype (f32 or bf16)

    w = w_ref[...]                      # resident, loaded once per step
    bias = bias_ref[...]                # (rows, L), f32

    for j in range(tb):                 # static, short, unrolled chunk loop
        sl = pl.ds(j * l, l)
        # in-kernel cast: avoids a wrapper-side HBM read+write pass over x
        xj = x_ref[:, sl].astype(cdt)                         # (NB*C_in, L)

        # (a) 1x1 conv over channels, all K partitions & NB samples fused in
        #     one MXU matmul, f32 accumulation.
        z = jnp.dot(w, xj, preferred_element_type=jnp.float32)
        z = z.astype(cdt)                                     # (K*rows, L)

        # (b) graph contraction: K accumulating matmuls, NB*C_out LHS rows.
        acc = jnp.dot(z[0:rows], bd_ref[0],
                      preferred_element_type=jnp.float32)
        for k in range(1, num_k):
            acc = acc + jnp.dot(z[k * rows:(k + 1) * rows], bd_ref[k],
                                preferred_element_type=jnp.float32)

        # (c) folded bias + ReLU, lane-dense (multiple-of-128) store.
        o_ref[:, sl] = jnp.maximum(acc + bias, 0.0).astype(o_ref.dtype)


def _pad_to_lane_divisor(v):
    """Smallest v_pad >= v that divides 128 (v <= 128) or is a multiple of 128."""
    if v <= 128:
        for d in (1, 2, 4, 8, 16, 32, 64, 128):
            if d >= v:
                return d
    return ((v + 127) // 128) * 128


def _pick_batch_block(n, c_in, c_out, t_chunks, row_target=64):
    """Samples per grid step.  NB must divide N and keep the x / out block
    sublane extents 8-aligned (or full).  Prefer NB*C_out >= row_target for
    MXU row utilization while keeping >= 2 grid steps (v7x megacore) when
    that is achievable."""
    divisors = [d for d in range(1, n + 1) if n % d == 0]
    valid = [d for d in divisors
             if ((d * c_in) % 8 == 0 or d == n)
             and ((d * c_out) % 8 == 0 or d == n)]

    def grid_ok(d):
        return (n // d) * t_chunks >= 2

    good = [d for d in valid if d * c_out >= row_target and grid_ok(d)]
    if good:
        return min(good)
    good = [d for d in valid if grid_ok(d)]
    if good:
        return max(good)
    return max(valid)


def _default_compute_dtype(x_dtype):
    """bf16 MXU compute (with f32 accumulation) on bf16-native generations."""
    if x_dtype == jnp.bfloat16:
        return jnp.bfloat16
    try:
        kind = jax.devices()[0].device_kind.lower()
    except Exception:
        return x_dtype
    if any(tag in kind for tag in ("v5 lite", "v5e", "v6", "v7")):
        return jnp.bfloat16
    return x_dtype


@functools.partial(jax.jit, static_argnames=("compute_dtype", "lanes_per_step",
                                             "row_target"))
def st_gcn_forward(x, A, weight, bias, *, compute_dtype=None,
                   lanes_per_step=512, row_target=64):
    """x: (N, C_in, T, V), A: (K, V, V), weight: (K, C_out, C_in),
    bias: (K, C_out).  Returns (ReLU(gcn(x, A)), A)."""
    N, C_in, T, V = x.shape
    K, C_out, _ = weight.shape
    assert A.shape == (K, V, V)
    out_dtype = x.dtype
    cdt = _default_compute_dtype(out_dtype) if compute_dtype is None \
        else compute_dtype

    # ---- lane-dense tiling: lane width is exactly 128 (pad V if needed) ----
    V_pad = _pad_to_lane_divisor(V)
    TT = max(1, 128 // V_pad)                 # frames per 128-lane chunk
    L = TT * V_pad                            # 128 (or V_pad if V > 128)
    TB = max(1, min(lanes_per_step // L, -(-T // TT)))   # chunks per grid step
    T_pad = -(-T // (TT * TB)) * (TT * TB)
    t_chunks = T_pad // (TT * TB)

    NB = _pick_batch_block(N, C_in, C_out, t_chunks, row_target=row_target)

    # ---- operand prep (pads are no-ops for already-aligned shapes) ---------
    if (T_pad, V_pad) != (T, V):
        x = jnp.pad(x, ((0, 0), (0, 0), (0, T_pad - T), (0, V_pad - V)))
        A_p = jnp.pad(A, ((0, 0), (0, V_pad - V), (0, V_pad - V)))
    else:
        A_p = A
    # x stays in its input dtype; the kernel casts each tile (no extra HBM pass).
    x2 = x.reshape(N * C_in, T_pad * V_pad)

    # Block-diagonal 1x1-conv weight kron(I_NB, W_k), rows ordered (k, n, c).
    w_big = jnp.einsum("nm,kci->kncmi", jnp.eye(NB, dtype=weight.dtype), weight)
    w_big = w_big.reshape(K * NB * C_out, NB * C_in).astype(cdt)

    # Block-diagonal adjacency kron(I_TT, A_pad[k]); small, VMEM-resident.
    bd = jnp.einsum("ts,kvw->ktvsw", jnp.eye(TT, dtype=A_p.dtype), A_p)
    bd = bd.reshape(K, L, L).astype(cdt)

    # Conv bias folded through the graph contraction:
    #   bias_out[c, (t, w)] = sum_k bias[k, c] * sum_v A[k, v, w]
    bias_l = jnp.einsum("kc,kw->cw", bias, A_p.sum(axis=1))       # (C_out, V_pad)
    bias_l = jnp.tile(bias_l, (NB, TT)).astype(jnp.float32)       # (NB*C_out, L)

    grid = (N // NB, t_chunks)
    y2 = pl.pallas_call(
        st_gcn_kernel,
        out_shape=jax.ShapeDtypeStruct((N * C_out, T_pad * V_pad), out_dtype),
        grid=grid,
        in_specs=[
            pl.BlockSpec((NB * C_in, TB * L), lambda n, t: (n, t)),     # streams
            pl.BlockSpec((K * NB * C_out, NB * C_in), lambda n, t: (0, 0)),
            pl.BlockSpec((K, L, L), lambda n, t: (0, 0, 0)),            # resident
            pl.BlockSpec((NB * C_out, L), lambda n, t: (0, 0)),         # resident
        ],
        out_specs=pl.BlockSpec((NB * C_out, TB * L), lambda n, t: (n, t)),
        compiler_params=pltpu.CompilerParams(
            dimension_semantics=("parallel", "parallel"),
            vmem_limit_bytes=32 * 1024 * 1024),
    )(x2, w_big, bd, bias_l)

    y = y2.reshape(N, C_out, T_pad, V_pad)[:, :, :T, :V]
    return y, A


def st_gcn_reference(x, A, weight, bias):
    # Pure-JAX mirror of ConvTemporalGraphical (1x1 conv -> view -> einsum) + ReLU.
    xk = jnp.einsum("kci,nitv->nkctv", weight, x) \
        + bias[None, :, :, None, None]
    y = jnp.einsum("nkctv,kvw->nctw", xk, A)
    return jnp.maximum(y, 0.0), A


if __name__ == "__main__":
    # Shapes consistent with st_gcn(in_channels=4, out_channels=8,
    # kernel_size=(temporal, 3)) -> K = kernel_size[1] = 3.
    N, C_in, C_out, T, V, K = 2, 4, 8, 8, 16, 3

    key = jax.random.PRNGKey(0)
    kx, ka, kw, kb = jax.random.split(key, 4)

    x = jax.random.normal(kx, (N, C_in, T, V), dtype=jnp.float32)
    A = jax.random.uniform(ka, (K, V, V), dtype=jnp.float32)
    weight = 0.1 * jax.random.normal(kw, (K, C_out, C_in), dtype=jnp.float32)
    bias = 0.1 * jax.random.normal(kb, (K, C_out), dtype=jnp.float32)

    y_ref, _ = st_gcn_reference(x, A, weight, bias)

    # Exact (f32 end-to-end) path: tight check.
    y32, A_out = st_gcn_forward(x, A, weight, bias, compute_dtype=jnp.float32)
    y32 = jax.block_until_ready(y32)
    assert y32.shape == (N, C_out, T, V) and A_out.shape == (K, V, V)
    if not np.allclose(np.asarray(y32), np.asarray(y_ref), rtol=1e-4, atol=1e-4):
        raise AssertionError("Pallas st_gcn (f32) mismatch vs reference")

    # Default path (bf16 MXU compute + f32 accumulation on v5e/v6e/v7x):
    # loose check because operands are rounded to bf16.
    y_def, _ = st_gcn_forward(x, A, weight, bias)
    y_def = jax.block_until_ready(y_def)
    if not np.allclose(np.asarray(y_def), np.asarray(y_ref), rtol=1e-1, atol=1e-1):
        raise AssertionError("Pallas st_gcn (default) mismatch vs reference")

    # Skeleton-like node count (V=25) exercising the V/T padding path.
    T2, V2 = 12, 25
    x2 = jax.random.normal(kx, (N, C_in, T2, V2), dtype=jnp.float32)
    A2 = jax.random.uniform(ka, (K, V2, V2), dtype=jnp.float32)
    yr2, _ = st_gcn_reference(x2, A2, weight, bias)
    yp2, _ = st_gcn_forward(x2, A2, weight, bias, compute_dtype=jnp.float32)
    yp2 = jax.block_until_ready(yp2)
    if not np.allclose(np.asarray(yp2), np.asarray(yr2), rtol=1e-4, atol=1e-4):
        raise AssertionError("Pallas st_gcn (padded V=25) mismatch vs reference")

    print("KERNEL_OK")
</pallas_src>

<mosaic_0001>
module attributes {stable_mosaic.version = 11 : i64} {
  func.func @st_gcn_kernel(%arg0: i32, %arg1: i32, %arg2: memref<8x128xf32, #tpu.memory_space<vmem>>, %arg3: memref<48x8xf32, #tpu.memory_space<vmem>>, %arg4: memref<3x128x128xf32, #tpu.memory_space<vmem>>, %arg5: memref<16x128xf32, #tpu.memory_space<vmem>>, %arg6: memref<16x128xf32, #tpu.memory_space<vmem>>) attributes {dimension_semantics = [#tpu.dimension_semantics<parallel>, #tpu.dimension_semantics<parallel>], iteration_bounds = array<i64: 1, 1>, scalar_prefetch = 0 : i64, scratch_operands = 0 : i64, tpu.core_type = #tpu.core_type<tc>, window_params = [{transform_indices = @transform_0, window_bounds = array<i64: 8, 128>}, {pipeline_mode = #tpu.pipeline_mode<synchronous>, transform_indices = @transform_1, window_bounds = array<i64: 48, 8>}, {pipeline_mode = #tpu.pipeline_mode<synchronous>, transform_indices = @transform_2, window_bounds = array<i64: 3, 128, 128>}, {pipeline_mode = #tpu.pipeline_mode<synchronous>, transform_indices = @transform_3, window_bounds = array<i64: 16, 128>}, {transform_indices = @transform_4, window_bounds = array<i64: 16, 128>}]} {
    %c0 = arith.constant 0 : index
    %c0_0 = arith.constant 0 : index
    %0 = vector.load %arg3[%c0, %c0_0] : memref<48x8xf32, #tpu.memory_space<vmem>>, vector<48x8xf32>
    %c0_1 = arith.constant 0 : index
    %c0_2 = arith.constant 0 : index
    %1 = vector.load %arg5[%c0_1, %c0_2] : memref<16x128xf32, #tpu.memory_space<vmem>>, vector<16x128xf32>
    %c0_3 = arith.constant 0 : index
    %c0_4 = arith.constant 0 : index
    %2 = vector.load %arg2[%c0_3, %c0_4] : memref<8x128xf32, #tpu.memory_space<vmem>>, vector<8x128xf32>
    %cst = arith.constant dense<0.000000e+00> : vector<48x128xf32>
    %3 = tpu.matmul %0, %2, %cst {dimension_numbers = #tpu.dot_dimension_numbers<[1], [0], [0], [1], [0, 0, 1, 1], [], []>} : vector<48x8xf32>, vector<8x128xf32>, vector<48x128xf32> -> vector<48x128xf32>
    %4 = vector.extract_strided_slice %3 {offsets = [0, 0], sizes = [16, 128], strides = [1, 1]} : vector<48x128xf32> to vector<16x128xf32>
    %c0_5 = arith.constant 0 : index
    %c0_6 = arith.constant 0 : index
    %c0_7 = arith.constant 0 : index
    %5 = vector.load %arg4[%c0_5, %c0_6, %c0_7] : memref<3x128x128xf32, #tpu.memory_space<vmem>>, vector<1x128x128xf32>
    %6 = vector.shape_cast %5 : vector<1x128x128xf32> to vector<128x128xf32>
    %cst_8 = arith.constant dense<0.000000e+00> : vector<16x128xf32>
    %7 = tpu.matmul %4, %6, %cst_8 {dimension_numbers = #tpu.dot_dimension_numbers<[1], [0], [0], [1], [0, 0, 1, 1], [], []>} : vector<16x128xf32>, vector<128x128xf32>, vector<16x128xf32> -> vector<16x128xf32>
    %8 = vector.extract_strided_slice %3 {offsets = [16, 0], sizes = [16, 128], strides = [1, 1]} : vector<48x128xf32> to vector<16x128xf32>
    %c1 = arith.constant 1 : index
    %c0_9 = arith.constant 0 : index
    %c0_10 = arith.constant 0 : index
    %9 = vector.load %arg4[%c1, %c0_9, %c0_10] : memref<3x128x128xf32, #tpu.memory_space<vmem>>, vector<1x128x128xf32>
    %10 = vector.shape_cast %9 : vector<1x128x128xf32> to vector<128x128xf32>
    %cst_11 = arith.constant dense<0.000000e+00> : vector<16x128xf32>
    %11 = tpu.matmul %8, %10, %cst_11 {dimension_numbers = #tpu.dot_dimension_numbers<[1], [0], [0], [1], [0, 0, 1, 1], [], []>} : vector<16x128xf32>, vector<128x128xf32>, vector<16x128xf32> -> vector<16x128xf32>
    %12 = arith.addf %7, %11 : vector<16x128xf32>
    %13 = vector.extract_strided_slice %3 {offsets = [32, 0], sizes = [16, 128], strides = [1, 1]} : vector<48x128xf32> to vector<16x128xf32>
    %c2 = arith.constant 2 : index
    %c0_12 = arith.constant 0 : index
    %c0_13 = arith.constant 0 : index
    %14 = vector.load %arg4[%c2, %c0_12, %c0_13] : memref<3x128x128xf32, #tpu.memory_space<vmem>>, vector<1x128x128xf32>
    %15 = vector.shape_cast %14 : vector<1x128x128xf32> to vector<128x128xf32>
    %cst_14 = arith.constant dense<0.000000e+00> : vector<16x128xf32>
    %16 = tpu.matmul %13, %15, %cst_14 {dimension_numbers = #tpu.dot_dimension_numbers<[1], [0], [0], [1], [0, 0, 1, 1], [], []>} : vector<16x128xf32>, vector<128x128xf32>, vector<16x128xf32> -> vector<16x128xf32>
    %17 = arith.addf %12, %16 : vector<16x128xf32>
    %18 = arith.addf %17, %1 : vector<16x128xf32>
    %cst_15 = arith.constant 0.000000e+00 : f32
    %19 = vector.broadcast %cst_15 : f32 to vector<16x128xf32>
    %20 = arith.maximumf %18, %19 : vector<16x128xf32>
    %c0_16 = arith.constant 0 : index
    %c0_17 = arith.constant 0 : index
    %21 = vector.load %arg6[%c0_16, %c0_17] : memref<16x128xf32, #tpu.memory_space<vmem>>, vector<16x128xf32>
    tpu.vector_store %arg6[%c0_16, %c0_17], %20 {strides = array<i32>} : memref<16x128xf32, #tpu.memory_space<vmem>>, vector<16x128xf32>,
    return
  }
  func.func @transform_0(%arg0: i32, %arg1: i32) -> (i32, i32) {
    %c0_i32 = arith.constant 0 : i32
    return %arg0, %arg1 : i32, i32
  }
  func.func @transform_1(%arg0: i32, %arg1: i32) -> (i32, i32) {
    %c0_i32 = arith.constant 0 : i32
    %c0_i32_0 = arith.constant 0 : i32
    %c0_i32_1 = arith.constant 0 : i32
    return %c0_i32, %c0_i32_0 : i32, i32
  }
  func.func @transform_2(%arg0: i32, %arg1: i32) -> (i32, i32, i32) {
    %c0_i32 = arith.constant 0 : i32
    %c0_i32_0 = arith.constant 0 : i32
    %c0_i32_1 = arith.constant 0 : i32
    %c0_i32_2 = arith.constant 0 : i32
    return %c0_i32, %c0_i32_0, %c0_i32_1 : i32, i32, i32
  }
  func.func @transform_3(%arg0: i32, %arg1: i32) -> (i32, i32) {
    %c0_i32 = arith.constant 0 : i32
    %c0_i32_0 = arith.constant 0 : i32
    %c0_i32_1 = arith.constant 0 : i32
    return %c0_i32, %c0_i32_0 : i32, i32
  }
  func.func @transform_4(%arg0: i32, %arg1: i32) -> (i32, i32) {
    %c0_i32 = arith.constant 0 : i32
    return %arg0, %arg1 : i32, i32
  }
}

</mosaic_0001>

<bundles_post_ra>
// kernel: tile.8
= control target key start
LH: loop header
LB: loop body
LE: loop exit
PB: predicated region body
PF: predicated region fallthrough
CT: control target
= control target key end

     0   :  { %s154_s0 = inlined_call_operand.vmem [shape: f32[8,16], index: 0, kind: input, shape index: {}]   ;;  %s155_s1 = inlined_call_operand.vmem [shape: f32[2,8,8,16], index: 1, kind: output, shape index: {}]  }
   0x1   :  { %v4_v0 = vld [vmem:[%s154_s0] ss:$0 sm:$0xff]  ;;  %v51_v1 = vld [vmem:[%s154_s0 + $0x1] ss:$0 sm:$0xff]  ;;  %v54_v2 = vld [vmem:[%s154_s0 + $0x2] ss:$0 sm:$0xff] }
   0x2   :  { %5 = vst [vmem:[%s155_s1] sm:$0xff] %v4_v0  ;;  %50 = vst [vmem:[%s155_s1 + $0x40] sm:$0xff] %v4_v0  ;;  %v57_v3 = vld [vmem:[%s154_s0 + $0x3] ss:$0 sm:$0xff]  ;;  %v60_v4 = vld [vmem:[%s154_s0 + $0x4] ss:$0 sm:$0xff] }
   0x3   :  { %52 = vst [vmem:[%s155_s1 + $0x8] sm:$0xff] %v51_v1  ;;  %53 = vst [vmem:[%s155_s1 + $0x48] sm:$0xff] %v51_v1  ;;  %v63_v5 = vld [vmem:[%s154_s0 + $0x5] ss:$0 sm:$0xff]  ;;  %v66_v6 = vld [vmem:[%s154_s0 + $0x6] ss:$0 sm:$0xff] }
   0x4   :  { %55 = vst [vmem:[%s155_s1 + $0x10] sm:$0xff] %v54_v2  ;;  %56 = vst [vmem:[%s155_s1 + $0x50] sm:$0xff] %v54_v2  ;;  %v69_v7 = vld [vmem:[%s154_s0 + $0x7] ss:$0 sm:$0xff] }
   0x5   :  { %58 = vst [vmem:[%s155_s1 + $0x18] sm:$0xff] %v57_v3  ;;  %59 = vst [vmem:[%s155_s1 + $0x58] sm:$0xff] %v57_v3 }
   0x6   :  { %61 = vst [vmem:[%s155_s1 + $0x20] sm:$0xff] %v60_v4  ;;  %62 = vst [vmem:[%s155_s1 + $0x60] sm:$0xff] %v60_v4 }
   0x7   :  { %64 = vst [vmem:[%s155_s1 + $0x28] sm:$0xff] %v63_v5  ;;  %65 = vst [vmem:[%s155_s1 + $0x68] sm:$0xff] %v63_v5 }
   0x8   :  { %67 = vst [vmem:[%s155_s1 + $0x30] sm:$0xff] %v66_v6  ;;  %68 = vst [vmem:[%s155_s1 + $0x70] sm:$0xff] %v66_v6 }
   0x9   :  { %70 = vst [vmem:[%s155_s1 + $0x38] sm:$0xff] %v69_v7  ;;  %71 = vst [vmem:[%s155_s1 + $0x78] sm:$0xff] %v69_v7 }

// kernel: tile.9
= control target key start
LH: loop header
LB: loop body
LE: loop exit
PB: predicated region body
PF: predicated region fallthrough
CT: control target
= control target key end

     0   :  { %vm4_vm0 = vcmask 1047556   ;;  %s209_s14 = smov 96   ;;  %s210_s19 = smov 112   ;;  %vm6_vm1 = vcmask 130048   ;;  %vm25_vm2 = vcmask 1048448   ;;  %vm46_vm3 = vcmask 917248   ;;  %s388_s0 = inlined_call_operand.vmem [shape: f32[2,8,8,16], index: 0, kind: input, shape index: {}]   ;;  %s389_s1 = inlined_call_operand.vmem [shape: f32[16,128], index: 1, kind: output, shape index: {}]  }
   0x1   :  { %v172_v0 = vld [vmem:[%s388_s0 + $0x6] ss:$8 sm:$0xf]   ;;  %v167_v3 = vld [vmem:[%s388_s0 + $0x7] ss:$8 sm:$0xf]  }
   0x2   :  { %v173_v1 = vld [vmem:[%s388_s0 + $0x6] ss:$8 sm:$0xf0]   ;;  %v168_v4 = vld [vmem:[%s388_s0 + $0x7] ss:$8 sm:$0xf0]  }
   0x3   :  { %v43_v2 = vsel %vm4_vm0, %v173_v1, %v172_v0  ;;  %v22_v5 = vsel %vm4_vm0, %v168_v4, %v167_v3  ;;  %v174_v6 = vld [vmem:[%s388_s0 + $0x46] ss:$8 sm:$0xf]   ;;  %v169_v9 = vld [vmem:[%s388_s0 + $0x47] ss:$8 sm:$0xf]  }
   0x4   :  { %44 = vrot.lane.b32.xlu1 %v43_v2, %s209_s14  ;;  %v175_v7 = vld [vmem:[%s388_s0 + $0x46] ss:$8 sm:$0xf0]   ;;  %23 = vrot.lane.b32.xlu0 %v22_v5, %s210_s19  ;;  %v170_v10 = vld [vmem:[%s388_s0 + $0x47] ss:$8 sm:$0xf0]  }
   0x5   :  { %v53_v8 = vsel %vm4_vm0, %v175_v7, %v174_v6  ;;  %v32_v11 = vsel %vm4_vm0, %v170_v10, %v169_v9  ;;  %v179_v12 = vld [vmem:[%s388_s0 + $0x45] ss:$8 sm:$0xf]   ;;  %v184_v18 = vld [vmem:[%s388_s0 + $0x44] ss:$8 sm:$0xf]  }
   0x6   :  { %v180_v13 = vld [vmem:[%s388_s0 + $0x45] ss:$8 sm:$0xf0]   ;;  %v185_v19 = vld [vmem:[%s388_s0 + $0x44] ss:$8 sm:$0xf0]  }
   0x7   :  { %v177_v14 = vld [vmem:[%s388_s0 + $0x5] ss:$8 sm:$0xf]   ;;  %v74_v16 = vsel %vm4_vm0, %v180_v13, %v179_v12  ;;  %v182_v20 = vld [vmem:[%s388_s0 + $0x4] ss:$8 sm:$0xf]   ;;  %v95_v22 = vsel %vm4_vm0, %v185_v19, %v184_v18 }
   0x8   :  { %54 = vrot.lane.b32.xlu1 %v53_v8, %s209_s14  ;;  %v178_v15 = vld [vmem:[%s388_s0 + $0x5] ss:$8 sm:$0xf0]   ;;  %33 = vrot.lane.b32.xlu0 %v32_v11, %s210_s19  ;;  %v183_v21 = vld [vmem:[%s388_s0 + $0x4] ss:$8 sm:$0xf0]  }
   0x9   :  { %v64_v17 = vsel %vm4_vm0, %v178_v15, %v177_v14  ;;  %s211_s11 = smov 80   ;;  %v85_v23 = vsel %vm4_vm0, %v183_v21, %v182_v20  ;;  %v189_v24 = vld [vmem:[%s388_s0 + $0x43] ss:$8 sm:$0xf]   ;;  %s212_s20 = smov 64   ;;  %vm67_vm4 = vcmask 786048  }
   0xa   :  { %v190_v25 = vld [vmem:[%s388_s0 + $0x43] ss:$8 sm:$0xf0]   ;;  %v194_v28 = vld [vmem:[%s388_s0 + $0x42] ss:$8 sm:$0xf]  }
   0xb   :  { %v187_v26 = vld [vmem:[%s388_s0 + $0x3] ss:$8 sm:$0xf]   ;;  %v195_v29 = vld [vmem:[%s388_s0 + $0x42] ss:$8 sm:$0xf0]   ;;  %v116_v30 = vsel %vm4_vm0, %v190_v25, %v189_v24 }
   0xc   :  { %75 = vrot.lane.b32.xlu1 %v74_v16, %s211_s11  ;;  %65 = vrot.lane.b32.xlu0 %v64_v17, %s211_s11  ;;  %v188_v27 = vld [vmem:[%s388_s0 + $0x3] ss:$8 sm:$0xf0]   ;;  %v192_v31 = vld [vmem:[%s388_s0 + $0x2] ss:$8 sm:$0xf]   ;;  %v137_v40 = vsel %vm4_vm0, %v195_v29, %v194_v28 }
   0xd   :  { %v2_v32 = vld [vmem:[%s388_s0] ss:$8 sm:$0xf]   ;;  %v106_v33 = vsel %vm4_vm0, %v188_v27, %v187_v26  ;;  %v193_v36 = vld [vmem:[%s388_s0 + $0x2] ss:$8 sm:$0xf0]  }
   0xe   :  { %v3_v34 = vld [vmem:[%s388_s0] ss:$8 sm:$0xf0]   ;;  %s213_s8 = smov 48   ;;  %v127_v41 = vsel %vm4_vm0, %v193_v36, %v192_v31  ;;  %s215_s21 = smov 16   ;;  %vm88_vm5 = vcmask 654848  }
   0xf   :  { %v164_v35 = vld [vmem:[%s388_s0 + $0x40] ss:$8 sm:$0xf]   ;;  %v5_v37 = vsel %vm4_vm0, %v3_v34, %v2_v32  ;;  %v199_v42 = vld [vmem:[%s388_s0 + $0x41] ss:$8 sm:$0xf]  }
  0x10   :  { %96 = vrot.lane.b32.xlu1 %v95_v22, %s212_s20  ;;  %86 = vrot.lane.b32.xlu0 %v85_v23, %s212_s20  ;;  %v165_v38 = vld [vmem:[%s388_s0 + $0x40] ss:$8 sm:$0xf0]   ;;  %7 = vst.msk [vmem:[%s389_s1] sm:$0xff] %vm6_vm1, %v5_v37   ;;  %vm109_vm6 = vcmask 523648   ;;  %vm130_vm7 = vcmask 392448  }
  0x11   :  { %v13_v39 = vsel %vm4_vm0, %v165_v38, %v164_v35  ;;  %v200_v43 = vld [vmem:[%s388_s0 + $0x41] ss:$8 sm:$0xf0]   ;;  %vm151_vm8 = vcmask 261248  }
  0x12   :  { %166 = vst.msk [vmem:[%s389_s1 + $0x8] sm:$0xff] %vm6_vm1, %v13_v39   ;;  %v197_v44 = vld [vmem:[%s388_s0 + $0x1] ss:$8 sm:$0xf]   ;;  %v158_v46 = vsel %vm4_vm0, %v200_v43, %v199_v42 }
  0x13   :  { %v198_v45 = vld [vmem:[%s388_s0 + $0x1] ss:$8 sm:$0xf0]   ;;  %s214_s0 = smov 32  }
  0x14   :  { %117 = vrot.lane.b32.xlu1 %v116_v30, %s213_s8  ;;  %107 = vrot.lane.b32.xlu0 %v106_v33, %s213_s8  ;;  %v148_v47 = vsel %vm4_vm0, %v198_v45, %v197_v44 }
  0x18   :  { %138 = vrot.lane.b32.xlu1 %v137_v40, %s214_s0  ;;  %128 = vrot.lane.b32.xlu0 %v127_v41, %s214_s0 }
  0x1c   :  { %159 = vrot.lane.b32.xlu1 %v158_v46, %s215_s21  ;;  %149 = vrot.lane.b32.xlu0 %v148_v47, %s215_s21 }
  0x76   :  { %v45_v48 = vpop.permute.xlu1 %44   ;;  %v24_v49 = vpop.permute.xlu0 %23  }
  0x77   :  { %26 = vst.msk [vmem:[%s389_s1] sm:$0xff] %vm25_vm2, %v24_v49  }
  0x78   :  { %47 = vst.msk [vmem:[%s389_s1] sm:$0xff] %vm46_vm3, %v45_v48  }
  0x7a   :  { %v55_v50 = vpop.permute.xlu1 %54   ;;  %v34_v51 = vpop.permute.xlu0 %33  }
  0x7b   :  { %171 = vst.msk [vmem:[%s389_s1 + $0x8] sm:$0xff] %vm25_vm2, %v34_v51  }
  0x7c   :  { %176 = vst.msk [vmem:[%s389_s1 + $0x8] sm:$0xff] %vm46_vm3, %v55_v50  }
  0x7e   :  { %v76_v52 = vpop.permute.xlu1 %75   ;;  %v66_v53 = vpop.permute.xlu0 %65  }
  0x7f   :  { %181 = vst.msk [vmem:[%s389_s1 + $0x8] sm:$0xff] %vm67_vm4, %v76_v52   ;;  %68 = vst.msk [vmem:[%s389_s1] sm:$0xff] %vm67_vm4, %v66_v53  }
  0x82   :  { %v97_v54 = vpop.permute.xlu1 %96   ;;  %v87_v55 = vpop.permute.xlu0 %86  }
  0x83   :  { %186 = vst.msk [vmem:[%s389_s1 + $0x8] sm:$0xff] %vm88_vm5, %v97_v54   ;;  %89 = vst.msk [vmem:[%s389_s1] sm:$0xff] %vm88_vm5, %v87_v55  }
  0x86   :  { %v118_v56 = vpop.permute.xlu1 %117   ;;  %v108_v57 = vpop.permute.xlu0 %107  }
  0x87   :  { %191 = vst.msk [vmem:[%s389_s1 + $0x8] sm:$0xff] %vm109_vm6, %v118_v56   ;;  %110 = vst.msk [vmem:[%s389_s1] sm:$0xff] %vm109_vm6, %v108_v57  }
  0x8a   :  { %v139_v58 = vpop.permute.xlu1 %138   ;;  %v129_v59 = vpop.permute.xlu0 %128  }
  0x8b   :  { %196 = vst.msk [vmem:[%s389_s1 + $0x8] sm:$0xff] %vm130_vm7, %v139_v58   ;;  %131 = vst.msk [vmem:[%s389_s1] sm:$0xff] %vm130_vm7, %v129_v59  }
  0x8e   :  { %v160_v60 = vpop.permute.xlu1 %159   ;;  %v150_v61 = vpop.permute.xlu0 %149  }
  0x8f   :  { %201 = vst.msk [vmem:[%s389_s1 + $0x8] sm:$0xff] %vm151_vm8, %v160_v60   ;;  %152 = vst.msk [vmem:[%s389_s1] sm:$0xff] %vm151_vm8, %v150_v61  }

// kernel: st_gcn_forward.1
= control target key start
LH: loop header
LB: loop body
LE: loop exit
PB: predicated region body
PF: predicated region fallthrough
CT: control target
= control target key end

     0   :  { %vm26_vm0 = vcmask 64512   ;;  %s850_s0 = inlined_call_operand.vmem [shape: f32[8,128], index: 0, kind: input, shape index: {}]   ;;  %s851_s1 = inlined_call_operand.vmem [shape: f32[48,8], index: 1, kind: input, shape index: {}]   ;;  %s852_s2 = inlined_call_operand.vmem [shape: f32[3,128,128], index: 2, kind: input, shape index: {}]   ;;  %s853_s3 = inlined_call_operand.vmem [shape: f32[16,128], index: 3, kind: input, shape index: {}]   ;;  %s854_s4 = inlined_call_operand.vmem [shape: f32[16,128], index: 4, kind: output, shape index: {}]  }
   0x1   :  { %v25_v0 = vld [vmem:[%s850_s0] sm:$0xff]  ;;  %v18_v2 = vld [vmem:[%s851_s1 + $0x8] sm:$0xff]  ;;  %v19_v3 = vld [vmem:[%s851_s1 + $0x10] sm:$0xff] }
   0x2   :  { %v17_v1 = vld [vmem:[%s851_s1] sm:$0xff]  ;;  %526 = vmatprep.subr.mxu0 %v25_v0  ;;  %v155_v4 = vld [vmem:[%s852_s2 + $0x78] sm:$0xff]  ;;  %v154_v5 = vld [vmem:[%s852_s2 + $0x70] sm:$0xff] }
   0x3   :  { %528 = vmatprep.mubr.msk.f32.mxu0 %vm26_vm0, %v17_v1  ;;  %527 = vmatpush3.msra.mxu0 %v25_v0  ;;  %v448_v6 = vld [vmem:[%s852_s2 + $0xf8] sm:$0xff]  ;;  %v153_v8 = vld [vmem:[%s852_s2 + $0x68] sm:$0xff]  ;;  %v21_v9 = vld [vmem:[%s851_s1 + $0x20] sm:$0xff] }
   0x4   :  { %529 = vmatmul.mubr.msk.f32.vlgmr.msra.gmra.mxu0 %vm26_vm0, %v18_v2  ;;  %572 = vmatprep.subr.mxu0 %v155_v4  ;;  %v20_v7 = vld [vmem:[%s851_s1 + $0x18] sm:$0xff]  ;;  %v447_v10 = vld [vmem:[%s852_s2 + $0xf0] sm:$0xff]  ;;  %v152_v11 = vld [vmem:[%s852_s2 + $0x60] sm:$0xff] }
   0x5   :  { %531 = vmatprep.mubr.msk.f32.mxu0 %vm26_vm0, %v19_v3  ;;  %573 = vmatpush3.msra.mxu0 %v155_v4  ;;  %v446_v12 = vld [vmem:[%s852_s2 + $0xe8] sm:$0xff]  ;;  %v445_v14 = vld [vmem:[%s852_s2 + $0xe0] sm:$0xff]  ;;  %v151_v15 = vld [vmem:[%s852_s2 + $0x58] sm:$0xff] }
   0x6   :  { %574 = vmatprep.subr.mxu0 %v154_v5  ;;  %537 = vmatprep.subr.mxu1 %v448_v6  ;;  %v22_v13 = vld [vmem:[%s851_s1 + $0x28] sm:$0xff]  ;;  %v444_v16 = vld [vmem:[%s852_s2 + $0xd8] sm:$0xff]  ;;  %v150_v17 = vld [vmem:[%s852_s2 + $0x50] sm:$0xff] }
   0x7   :  { %575 = vmatpush3.msra.mxu0 %v154_v5  ;;  %538 = vmatpush3.msra.mxu1 %v448_v6  ;;  %v443_v18 = vld [vmem:[%s852_s2 + $0xd0] sm:$0xff]  ;;  %v149_v19 = vld [vmem:[%s852_s2 + $0x48] sm:$0xff]  ;;  %v148_v21 = vld [vmem:[%s852_s2 + $0x40] sm:$0xff] }
   0x8   :  { %532 = vmatmul.mubr.msk.f32.gmra.mxu0 %vm26_vm0, %v20_v7  ;;  %576 = vmatprep.subr.mxu0 %v153_v8  ;;  %v442_v20 = vld [vmem:[%s852_s2 + $0xc8] sm:$0xff]  ;;  %v441_v22 = vld [vmem:[%s852_s2 + $0xc0] sm:$0xff]  ;;  %v147_v23 = vld [vmem:[%s852_s2 + $0x38] sm:$0xff] }
   0x9   :  { %534 = vmatprep.mubr.msk.f32.mxu0 %vm26_vm0, %v21_v9  ;;  %539 = vmatprep.subr.mxu1 %v447_v10  ;;  %v440_v24 = vld [vmem:[%s852_s2 + $0xb8] sm:$0xff]  ;;  %v146_v25 = vld [vmem:[%s852_s2 + $0x30] sm:$0xff]  ;;  %v145_v27 = vld [vmem:[%s852_s2 + $0x28] sm:$0xff] }
   0xa   :  { %577 = vmatpush3.msra.mxu0 %v153_v8  ;;  %540 = vmatpush3.msra.mxu1 %v447_v10  ;;  %v439_v26 = vld [vmem:[%s852_s2 + $0xb0] sm:$0xff]  ;;  %v438_v28 = vld [vmem:[%s852_s2 + $0xa8] sm:$0xff]  ;;  %v144_v29 = vld [vmem:[%s852_s2 + $0x20] sm:$0xff] }
   0xb   :  { %578 = vmatprep.subr.mxu0 %v152_v11  ;;  %541 = vmatprep.subr.mxu1 %v446_v12  ;;  %v437_v30 = vld [vmem:[%s852_s2 + $0xa0] sm:$0xff]  ;;  %v143_v31 = vld [vmem:[%s852_s2 + $0x18] sm:$0xff]  ;;  %v142_v33 = vld [vmem:[%s852_s2 + $0x10] sm:$0xff] }
   0xc   :  { %535 = vmatmul.mubr.msk.f32.gmra.mxu0 %vm26_vm0, %v22_v13  ;;  %542 = vmatpush3.msra.mxu1 %v446_v12  ;;  %v436_v32 = vld [vmem:[%s852_s2 + $0x98] sm:$0xff]  ;;  %v141_v34 = vld [vmem:[%s852_s2 + $0x8] sm:$0xff]  ;;  %v435_v35 = vld [vmem:[%s852_s2 + $0x90] sm:$0xff] }
   0xd   :  { %579 = vmatpush3.msra.mxu0 %v152_v11  ;;  %543 = vmatprep.subr.mxu1 %v445_v14  ;;  %v140_v36 = vld [vmem:[%s852_s2] sm:$0xff]  ;;  %v434_v37 = vld [vmem:[%s852_s2 + $0x88] sm:$0xff]  ;;  %v464_v39 = vld [vmem:[%s852_s2 + $0x178] sm:$0xff] }
   0xe   :  { %580 = vmatprep.subr.mxu0 %v151_v15  ;;  %544 = vmatpush3.msra.mxu1 %v445_v14  ;;  %v433_v38 = vld [vmem:[%s852_s2 + $0x80] sm:$0xff]  ;;  %v463_v44 = vld [vmem:[%s852_s2 + $0x170] sm:$0xff]  ;;  %v462_v46 = vld [vmem:[%s852_s2 + $0x168] sm:$0xff] }
   0xf   :  { %581 = vmatpush3.msra.mxu0 %v151_v15  ;;  %545 = vmatprep.subr.mxu1 %v444_v16  ;;  %v461_v48 = vld [vmem:[%s852_s2 + $0x160] sm:$0xff]  ;;  %v460_v49 = vld [vmem:[%s852_s2 + $0x158] sm:$0xff]  ;;  %v459_v50 = vld [vmem:[%s852_s2 + $0x150] sm:$0xff] }
  0x10   :  { %582 = vmatprep.subr.mxu0 %v150_v17  ;;  %546 = vmatpush3.msra.mxu1 %v444_v16  ;;  %v458_v51 = vld [vmem:[%s852_s2 + $0x148] sm:$0xff]  ;;  %v457_v52 = vld [vmem:[%s852_s2 + $0x140] sm:$0xff]  ;;  %v456_v53 = vld [vmem:[%s852_s2 + $0x138] sm:$0xff] }
  0x11   :  { %583 = vmatpush3.msra.mxu0 %v150_v17  ;;  %547 = vmatprep.subr.mxu1 %v443_v18  ;;  %v455_v54 = vld [vmem:[%s852_s2 + $0x130] sm:$0xff]  ;;  %v454_v55 = vld [vmem:[%s852_s2 + $0x128] sm:$0xff]  ;;  %v453_v56 = vld [vmem:[%s852_s2 + $0x120] sm:$0xff] }
  0x12   :  { %584 = vmatprep.subr.mxu0 %v149_v19  ;;  %548 = vmatpush3.msra.mxu1 %v443_v18  ;;  %v452_v57 = vld [vmem:[%s852_s2 + $0x118] sm:$0xff]  ;;  %v451_v58 = vld [vmem:[%s852_s2 + $0x110] sm:$0xff]  ;;  %v450_v59 = vld [vmem:[%s852_s2 + $0x108] sm:$0xff] }
  0x13   :  { %585 = vmatpush3.msra.mxu0 %v149_v19  ;;  %549 = vmatprep.subr.mxu1 %v442_v20  ;;  %v449_v60 = vld [vmem:[%s852_s2 + $0x100] sm:$0xff]  ;;  %v24_v2 = vld [vmem:[%s853_s3 + $0x8] sm:$0xff] }
  0x14   :  { %586 = vmatprep.subr.mxu0 %v148_v21  ;;  %550 = vmatpush3.msra.mxu1 %v442_v20  ;;  %v23_v6 = vld [vmem:[%s853_s3] sm:$0xff] }
  0x15   :  { %587 = vmatpush3.msra.mxu0 %v148_v21  ;;  %551 = vmatprep.subr.mxu1 %v441_v22 }
  0x16   :  { %588 = vmatprep.subr.mxu0 %v147_v23  ;;  %552 = vmatpush3.msra.mxu1 %v441_v22 }
  0x17   :  { %589 = vmatpush3.msra.mxu0 %v147_v23  ;;  %553 = vmatprep.subr.mxu1 %v440_v24 }
  0x18   :  { %590 = vmatprep.subr.mxu0 %v146_v25  ;;  %554 = vmatpush3.msra.mxu1 %v440_v24 }
  0x19   :  { %591 = vmatpush3.msra.mxu0 %v146_v25  ;;  %555 = vmatprep.subr.mxu1 %v439_v26 }
  0x1a   :  { %592 = vmatprep.subr.mxu0 %v145_v27  ;;  %556 = vmatpush3.msra.mxu1 %v439_v26 }
  0x1b   :  { %593 = vmatpush3.msra.mxu0 %v145_v27  ;;  %557 = vmatprep.subr.mxu1 %v438_v28 }
  0x1c   :  { %594 = vmatprep.subr.mxu0 %v144_v29  ;;  %558 = vmatpush3.msra.mxu1 %v438_v28 }
  0x1d   :  { %595 = vmatpush3.msra.mxu0 %v144_v29  ;;  %559 = vmatprep.subr.mxu1 %v437_v30 }
  0x1e   :  { %596 = vmatprep.subr.mxu0 %v143_v31  ;;  %560 = vmatpush3.msra.mxu1 %v437_v30 }
  0x1f   :  { %597 = vmatpush3.msra.mxu0 %v143_v31  ;;  %561 = vmatprep.subr.mxu1 %v436_v32 }
  0x20   :  { %598 = vmatprep.subr.mxu0 %v142_v33  ;;  %562 = vmatpush3.msra.mxu1 %v436_v32 }
  0x21   :  { %599 = vmatpush3.msra.mxu0 %v142_v33  ;;  %563 = vmatprep.subr.mxu1 %v435_v35 }
  0x22   :  { %600 = vmatprep.subr.mxu0 %v141_v34  ;;  %564 = vmatpush3.msra.mxu1 %v435_v35 }
  0x23   :  { %601 = vmatpush3.msra.mxu0 %v141_v34  ;;  %565 = vmatprep.subr.mxu1 %v434_v37 }
  0x24   :  { %602 = vmatprep.subr.mxu0 %v140_v36  ;;  %566 = vmatpush3.msra.mxu1 %v434_v37 }
  0x25   :  { %603 = vmatpush3.msra.mxu0 %v140_v36  ;;  %567 = vmatprep.subr.mxu1 %v433_v38 }
  0x26   :  { %568 = vmatpush3.msra.mxu1 %v433_v38 }
  0x27   :  { %607 = vmatprep.subr.mxu1 %v464_v39 }
  0xc4   :  { %v530_v40 = vpop.f32.mrf.mxu0 }
  0xc6   :  { %v111_v41 = vpop.f32.mrf.mxu0 }
  0xc7   :  { %604 = vmatprep.mubr.f32.mxu0 %v111_v41 }
  0xc8   :  { %v533_v42 = vpop.f32.mrf.mxu0  ;;  %605 = vmatmul.mubr.f32.vlgmr.msra.gmra.mxu0 %v530_v40 }
  0xca   :  { %v121_v43 = vpop.f32.mrf.mxu0 }
  0xcb   :  { %569 = vmatprep.mubr.f32.mxu1 %v121_v43 }
  0xcc   :  { %570 = vmatmul.mubr.f32.vlgmr.msra.gmra.mxu1 %v533_v42  ;;  %v536_v45 = vpop.f32.mrf.mxu0 }
  0xcd   :  { %608 = vmatpush3.msra.mxu1 %v464_v39 }
  0xce   :  { %609 = vmatprep.subr.mxu1 %v463_v44  ;;  %v131_v47 = vpop.f32.mrf.mxu0 }
  0xcf   :  { %610 = vmatpush3.msra.mxu1 %v463_v44  ;;  %639 = vmatprep.mubr.f32.mxu1 %v131_v47 }
  0xd0   :  { %611 = vmatprep.subr.mxu1 %v462_v46 }
  0xd1   :  { %612 = vmatpush3.msra.mxu1 %v462_v46 }
  0xd2   :  { %613 = vmatprep.subr.mxu1 %v461_v48 }
  0xd3   :  { %614 = vmatpush3.msra.mxu1 %v461_v48 }
  0xd4   :  { %615 = vmatprep.subr.mxu1 %v460_v49 }
  0xd5   :  { %616 = vmatpush3.msra.mxu1 %v460_v49 }
  0xd6   :  { %617 = vmatprep.subr.mxu1 %v459_v50 }
  0xd7   :  { %618 = vmatpush3.msra.mxu1 %v459_v50 }
  0xd8   :  { %619 = vmatprep.subr.mxu1 %v458_v51 }
  0xd9   :  { %620 = vmatpush3.msra.mxu1 %v458_v51 }
  0xda   :  { %621 = vmatprep.subr.mxu1 %v457_v52 }
  0xdb   :  { %622 = vmatpush3.msra.mxu1 %v457_v52 }
  0xdc   :  { %623 = vmatprep.subr.mxu1 %v456_v53 }
  0xdd   :  { %624 = vmatpush3.msra.mxu1 %v456_v53 }
  0xde   :  { %625 = vmatprep.subr.mxu1 %v455_v54 }
  0xdf   :  { %626 = vmatpush3.msra.mxu1 %v455_v54 }
  0xe0   :  { %627 = vmatprep.subr.mxu1 %v454_v55 }
  0xe1   :  { %628 = vmatpush3.msra.mxu1 %v454_v55 }
  0xe2   :  { %629 = vmatprep.subr.mxu1 %v453_v56 }
  0xe3   :  { %630 = vmatpush3.msra.mxu1 %v453_v56 }
  0xe4   :  { %631 = vmatprep.subr.mxu1 %v452_v57 }
  0xe5   :  { %632 = vmatpush3.msra.mxu1 %v452_v57 }
  0xe6   :  { %633 = vmatprep.subr.mxu1 %v451_v58 }
  0xe7   :  { %634 = vmatpush3.msra.mxu1 %v451_v58 }
  0xe8   :  { %635 = vmatprep.subr.mxu1 %v450_v59 }
  0xe9   :  { %636 = vmatpush3.msra.mxu1 %v450_v59 }
  0xea   :  { %637 = vmatprep.subr.mxu1 %v449_v60 }
  0xeb   :  { %638 = vmatpush3.msra.mxu1 %v449_v60 }
  0xec   :  { %640 = vmatmul.mubr.f32.vlgmr.msra.gmra.mxu1 %v536_v45 }
 0x188   :  { %v606_v62 = vpop.f32.mrf.mxu0 }
 0x18a   :  { %v314_v1 = vpop.f32.mrf.mxu0 }
 0x18c   :  { %v571_v61 = vpop.f32.mrf.mxu1 }
 0x18d   :  { %v320_v0 = vadd.f32 %v606_v62, %v571_v61 }
 0x18e   :  { %v239_v63 = vpop.f32.mrf.mxu1 }
 0x18f   :  { %v315_v4 = vadd.f32 %v314_v1, %v239_v63 }
 0x1ac   :  { %v641_v3 = vpop.f32.mrf.mxu1 }
 0x1ad   :  { %v416_v5 = vadd.f32 %v641_v3, %v320_v0 }
 0x1ae   :  { %v406_v7 = vpop.f32.mrf.mxu1 }
 0x1af   :  { %v418_v8 = vadd.f32 %v416_v5, %v24_v2  ;;  %v415_v9 = vadd.f32 %v406_v7, %v315_v4 }
 0x1b1   :  { %v420_v10 = vmax.f32 %v418_v8, 0.0  ;;  %v417_v11 = vadd.f32 %v415_v9, %v23_v6 }
 0x1b3   :  { %422 = vst [vmem:[%s854_s4 + $0x8] sm:$0xff] %v420_v10  ;;  %v419_v12 = vmax.f32 %v417_v11, 0.0 }
 0x1b5   :  { %421 = vst [vmem:[%s854_s4] sm:$0xff] %v419_v12 }

</bundles_post_ra>
